<compile_context>
chip_gen: v6e
topology: v6e:2x2x1
jax: 0.10.0
libtpu: 0.0.40
codegen_flags: <defaults>
</compile_context>

<pallas_src>
import jax
import jax.numpy as jnp
from jax.experimental import pallas as pl
from jax.experimental.pallas import tpu as pltpu


def patch_embed_kernel(x_ref, w_ref, b_ref, o_ref):
    # x_ref: (TM, K) rows of flattened patches (compute dtype, typically bf16)
    # w_ref: (K, E)  projection weight, resident & single-buffered
    # b_ref: (1, E)  f32 bias
    # o_ref: (TM, E) lane-dense output tile (E multiple of 128 -> unmasked stores)
    acc = jnp.dot(x_ref[...], w_ref[...], preferred_element_type=jnp.float32)
    o_ref[...] = (acc + b_ref[...]).astype(o_ref.dtype)


def _vmem_capacity_bytes():
    try:
        return int(pltpu.get_tpu_info().vmem_capacity_bytes)
    except Exception:
        return 64 << 20  # conservative default (v7x per-TensorCore VMEM)


def _choose_row_tile(total_rows, per_row_bytes, fixed_bytes, vmem_budget):
    """Pick (row_tile, pad_rows). Prefers tiles that divide total_rows (no pad copy)."""
    cap = (vmem_budget - fixed_bytes) // max(per_row_bytes, 1)
    cap = max(8, min(1024, (cap // 8) * 8))
    # Small problems: one full-extent block (legal even if not a multiple of 8).
    if total_rows <= cap and (total_rows < 2048 or total_rows % 8 != 0):
        return total_rows, 0
    divs = [d for d in range(8, min(cap, total_rows) + 1, 8)
            if total_rows % d == 0]
    if divs:
        # Prefer >= 8 grid steps (2 TensorCores x >= 4 pipelined steps) while the
        # tile stays in the 256+ sweet spot; otherwise take the largest divisor.
        deep = [d for d in divs if total_rows // d >= 8 and d >= 256]
        return (max(deep) if deep else max(divs)), 0
    # Awkward row counts: minimal zero-padding fallback (extra HBM copy).
    tm = min(cap, 512)
    return tm, (-total_rows) % tm


def patch_embed_pallas(x, weight, bias, patch_size,
                       compute_dtype=jnp.bfloat16, out_dtype=None,
                       tokens_out=False):
    """PatchEmbed.forward (norm=None).

    x:      (B, C, H, W)   PyTorch NCHW layout.
    weight: (E, C, ps, ps) PyTorch Conv2d weight.
    bias:   (E,)
    Returns (B, E, H//ps, W//ps) == nn.Conv2d(C, E, ps, stride=ps)(x),
    or (B, Hp*Wp, E) token layout if tokens_out=True.
    """
    B, C, H, W = x.shape
    ps = patch_size
    assert H % ps == 0 and W % ps == 0, "image size must be divisible by patch size"
    Hp, Wp = H // ps, W // ps
    E = weight.shape[0]
    K = C * ps * ps
    M = B * Hp * Wp
    out_dtype = x.dtype if out_dtype is None else out_dtype

    # ---- space-to-depth (layout only). Cast first so the copy moves half the bytes.
    xc = x.astype(compute_dtype)
    rows = xc.reshape(B, C, Hp, ps, Wp, ps)
    rows = rows.transpose(0, 2, 4, 1, 3, 5).reshape(M, K)   # (c, kh, kw) row order

    # Conv weight (E, C, ps, ps) -> (K, E) matching the (c, kh, kw) row order.
    w2d = jnp.asarray(weight).reshape(E, K).T.astype(compute_dtype)
    b2d = jnp.asarray(bias, jnp.float32).reshape(1, E)       # bias added in f32

    in_bytes = jnp.dtype(compute_dtype).itemsize
    out_bytes = jnp.dtype(out_dtype).itemsize

    vmem_cap = _vmem_capacity_bytes()
    fixed = K * E * in_bytes + 2 * E * 4 + (1 << 20)          # weight + bias + slack
    per_row = 2 * K * in_bytes + 2 * E * out_bytes            # double-buffered in/out tiles
    tm, pad = _choose_row_tile(M, per_row, fixed, int(0.7 * vmem_cap))

    if pad:  # rare fallback path only
        rows = jnp.concatenate([rows, jnp.zeros((pad, K), rows.dtype)], axis=0)
    Mp = M + pad
    n_tiles = Mp // tm

    const_spec_kwargs = {}
    if hasattr(pl, "Buffered"):
        # Grid-invariant operands are fetched once; no need for double buffers.
        const_spec_kwargs = dict(pipeline_mode=pl.Buffered(1))

    cost = pl.CostEstimate(
        flops=2 * M * K * E,
        bytes_accessed=M * K * in_bytes + K * E * in_bytes + M * E * out_bytes + E * 4,
        transcendentals=0)

    out = pl.pallas_call(
        patch_embed_kernel,
        out_shape=jax.ShapeDtypeStruct((Mp, E), out_dtype),
        grid=(n_tiles,),
        in_specs=[
            pl.BlockSpec((tm, K), lambda i: (i, 0)),                       # row tile
            pl.BlockSpec((K, E), lambda i: (0, 0), **const_spec_kwargs),   # weight
            pl.BlockSpec((1, E), lambda i: (0, 0), **const_spec_kwargs),   # bias
        ],
        out_specs=pl.BlockSpec((tm, E), lambda i: (i, 0)),
        compiler_params=pltpu.CompilerParams(
            dimension_semantics=("parallel",),
            vmem_limit_bytes=int(0.85 * vmem_cap)),
        cost_estimate=cost,
    )(rows, w2d, b2d)

    out = out[:M] if pad else out
    if tokens_out:
        # Consumer accepts token layout -> skip the NCHW writeback entirely.
        return out.reshape(B, Hp * Wp, E)
    out = out.reshape(B, Hp, Wp, E)
    return out.transpose(0, 3, 1, 2)   # module semantics: (B, E, Hp, Wp)


def reference(x, weight, bias, ps):
    """Pure-JAX reference: the actual strided convolution."""
    out = jax.lax.conv_general_dilated(
        x, weight, window_strides=(ps, ps), padding="VALID",
        dimension_numbers=("NCHW", "OIHW", "NCHW"),
        precision=jax.lax.Precision.HIGHEST)
    return out + bias.reshape(1, -1, 1, 1)


if __name__ == "__main__":
    key = jax.random.PRNGKey(0)
    kx, kw, kb = jax.random.split(key, 3)

    # Small shapes consistent with the module: img_size=32, patch_size=4,
    # in_chans=3; embed_dim=128 keeps the output lane-dense (full 128 lanes).
    B, C, H, W = 2, 3, 32, 32
    ps, E = 4, 128

    x = jax.random.normal(kx, (B, C, H, W), dtype=jnp.float32)
    weight = 0.1 * jax.random.normal(kw, (E, C, ps, ps), dtype=jnp.float32)
    bias = 0.1 * jax.random.normal(kb, (E,), dtype=jnp.float32)

    ref = jax.block_until_ready(reference(x, weight, bias, ps))

    # Exactness check with an f32 compute path.
    out_f32 = jax.block_until_ready(
        patch_embed_pallas(x, weight, bias, ps, compute_dtype=jnp.float32))
    assert out_f32.shape == (B, E, H // ps, W // ps), out_f32.shape
    err32 = float(jnp.max(jnp.abs(out_f32 - ref)))
    assert err32 < 1e-3, f"f32 path max abs err {err32}"

    # Default path (bf16 operands, f32 accumulation): looser tolerance vs f32 conv.
    out_bf = jax.block_until_ready(patch_embed_pallas(x, weight, bias, ps))
    assert out_bf.shape == (B, E, H // ps, W // ps), out_bf.shape
    err_bf = float(jnp.max(jnp.abs(out_bf - ref)))
    assert err_bf < 8e-2, f"bf16 path max abs err {err_bf}"

    print("KERNEL_OK")
</pallas_src>

<mosaic_0001>
module attributes {stable_mosaic.version = 11 : i64} {
  func.func @patch_embed_kernel(%arg0: i32, %arg1: memref<128x48xf32, #tpu.memory_space<vmem>>, %arg2: memref<48x128xf32, #tpu.memory_space<vmem>>, %arg3: memref<1x128xf32, #tpu.memory_space<vmem>>, %arg4: memref<128x128xf32, #tpu.memory_space<vmem>>) attributes {dimension_semantics = [#tpu.dimension_semantics<parallel>], iteration_bounds = array<i64: 1>, scalar_prefetch = 0 : i64, scratch_operands = 0 : i64, tpu.core_type = #tpu.core_type<tc>, window_params = [{transform_indices = @transform_0, window_bounds = array<i64: 128, 48>}, {pipeline_mode = #tpu.pipeline_mode<synchronous>, transform_indices = @transform_1, window_bounds = array<i64: 48, 128>}, {pipeline_mode = #tpu.pipeline_mode<synchronous>, transform_indices = @transform_2, window_bounds = array<i64: 1, 128>}, {transform_indices = @transform_3, window_bounds = array<i64: 128, 128>}]} {
    %c0 = arith.constant 0 : index
    %c0_0 = arith.constant 0 : index
    %0 = vector.load %arg1[%c0, %c0_0] : memref<128x48xf32, #tpu.memory_space<vmem>>, vector<128x48xf32>
    %c0_1 = arith.constant 0 : index
    %c0_2 = arith.constant 0 : index
    %1 = vector.load %arg2[%c0_1, %c0_2] : memref<48x128xf32, #tpu.memory_space<vmem>>, vector<48x128xf32>
    %cst = arith.constant dense<0.000000e+00> : vector<128x128xf32>
    %2 = tpu.matmul %0, %1, %cst {dimension_numbers = #tpu.dot_dimension_numbers<[1], [0], [0], [1], [0, 0, 1, 1], [], []>} : vector<128x48xf32>, vector<48x128xf32>, vector<128x128xf32> -> vector<128x128xf32>
    %c0_3 = arith.constant 0 : index
    %c0_4 = arith.constant 0 : index
    %3 = vector.load %arg3[%c0_3, %c0_4] : memref<1x128xf32, #tpu.memory_space<vmem>>, vector<1x128xf32>
    %4 = vector.broadcast %3 : vector<1x128xf32> to vector<128x128xf32>
    %5 = arith.addf %2, %4 : vector<128x128xf32>
    %c0_5 = arith.constant 0 : index
    %c0_6 = arith.constant 0 : index
    %6 = vector.load %arg4[%c0_5, %c0_6] : memref<128x128xf32, #tpu.memory_space<vmem>>, vector<128x128xf32>
    tpu.vector_store %arg4[%c0_5, %c0_6], %5 {strides = array<i32>} : memref<128x128xf32, #tpu.memory_space<vmem>>, vector<128x128xf32>,
    return
  }
  func.func @transform_0(%arg0: i32) -> (i32, i32) {
    %c0_i32 = arith.constant 0 : i32
    %c0_i32_0 = arith.constant 0 : i32
    return %arg0, %c0_i32 : i32, i32
  }
  func.func @transform_1(%arg0: i32) -> (i32, i32) {
    %c0_i32 = arith.constant 0 : i32
    %c0_i32_0 = arith.constant 0 : i32
    %c0_i32_1 = arith.constant 0 : i32
    return %c0_i32, %c0_i32_0 : i32, i32
  }
  func.func @transform_2(%arg0: i32) -> (i32, i32) {
    %c0_i32 = arith.constant 0 : i32
    %c0_i32_0 = arith.constant 0 : i32
    %c0_i32_1 = arith.constant 0 : i32
    return %c0_i32, %c0_i32_0 : i32, i32
  }
  func.func @transform_3(%arg0: i32) -> (i32, i32) {
    %c0_i32 = arith.constant 0 : i32
    %c0_i32_0 = arith.constant 0 : i32
    return %arg0, %c0_i32 : i32, i32
  }
}

</mosaic_0001>

<bundles_post_ra>
// kernel: tpu_custom_call.1
= control target key start
LH: loop header
LB: loop body
LE: loop exit
PB: predicated region body
PF: predicated region fallthrough
CT: control target
= control target key end

     0   :  { %s493_s0 = inlined_call_operand.vmem [shape: f32[128,48], index: 0, kind: input, shape index: {}]   ;;  %s494_s1 = inlined_call_operand.vmem [shape: f32[48,128], index: 1, kind: input, shape index: {}]   ;;  %s495_s2 = inlined_call_operand.vmem [shape: f32[1,128], index: 2, kind: input, shape index: {}]   ;;  %s496_s3 = inlined_call_operand.hbm [shape: f32[128,128], index: 3, kind: output, shape index: {}]  }
   0x1   :  { %v36_v0 = vld [vmem:[%s494_s1 + $0x28] sm:$0xff]  ;;  %v35_v1 = vld [vmem:[%s494_s1 + $0x20] sm:$0xff]  ;;  %v34_v2 = vld [vmem:[%s494_s1 + $0x18] sm:$0xff] }
   0x2   :  { %309 = vmatprep.subr.mxu0 %v36_v0  ;;  %345 = vmatprep.subr.mxu1 %v36_v0  ;;  %v33_v3 = vld [vmem:[%s494_s1 + $0x10] sm:$0xff]  ;;  %v32_v4 = vld [vmem:[%s494_s1 + $0x8] sm:$0xff] }
   0x3   :  { %310 = vmatpush3.msra.mxu0 %v36_v0  ;;  %351 = vmatpush3.msra.mxu1 %v36_v0 }
   0x4   :  { %311 = vmatprep.subr.mxu0 %v35_v1  ;;  %346 = vmatprep.subr.mxu1 %v35_v1 }
   0x5   :  { %312 = vmatpush3.msra.mxu0 %v35_v1  ;;  %352 = vmatpush3.msra.mxu1 %v35_v1 }
   0x6   :  { %313 = vmatprep.subr.mxu0 %v34_v2  ;;  %347 = vmatprep.subr.mxu1 %v34_v2 }
   0x7   :  { %314 = vmatpush3.msra.mxu0 %v34_v2  ;;  %353 = vmatpush3.msra.mxu1 %v34_v2 }
   0x8   :  { %315 = vmatprep.subr.mxu0 %v33_v3  ;;  %348 = vmatprep.subr.mxu1 %v33_v3 }
   0x9   :  { %8 = vsyncpa [#allocation3], 0  ;;  %316 = vmatpush3.msra.mxu0 %v33_v3  ;;  %354 = vmatpush3.msra.mxu1 %v33_v3  ;;  %v31_v5 = vld [vmem:[%s494_s1] sm:$0xff]  ;;  %vm44_vm0 = vcmask 392192   ;;  %v16_v8 = vld [vmem:[%s493_s0 + $0x8] sm:$0xff] }
   0xa   :  { %317 = vmatprep.subr.mxu0 %v32_v4  ;;  %349 = vmatprep.subr.mxu1 %v32_v4  ;;  %v15_v6 = vld [vmem:[%s493_s0] sm:$0xff]  ;;  %v24_v9 = vld [vmem:[%s493_s0 + $0x48] sm:$0xff]  ;;  %v17_v10 = vld [vmem:[%s493_s0 + $0x10] sm:$0xff] }
   0xb   :  { %318 = vmatpush3.msra.mxu0 %v32_v4  ;;  %355 = vmatpush3.msra.mxu1 %v32_v4  ;;  %v23_v7 = vld [vmem:[%s493_s0 + $0x40] sm:$0xff]  ;;  %v25_v11 = vld [vmem:[%s493_s0 + $0x50] sm:$0xff]  ;;  %v18_v12 = vld [vmem:[%s493_s0 + $0x18] sm:$0xff] }
   0xc   :  { %319 = vmatprep.subr.mxu0 %v31_v5  ;;  %350 = vmatprep.subr.mxu1 %v31_v5  ;;  %v26_v13 = vld [vmem:[%s493_s0 + $0x58] sm:$0xff]  ;;  %v19_v14 = vld [vmem:[%s493_s0 + $0x20] sm:$0xff]  ;;  %v20_v16 = vld [vmem:[%s493_s0 + $0x28] sm:$0xff] }
   0xd   :  { %320 = vmatpush3.msra.mxu0 %v31_v5  ;;  %356 = vmatpush3.msra.mxu1 %v31_v5  ;;  %v27_v15 = vld [vmem:[%s493_s0 + $0x60] sm:$0xff]  ;;  %v28_v17 = vld [vmem:[%s493_s0 + $0x68] sm:$0xff]  ;;  %v21_v18 = vld [vmem:[%s493_s0 + $0x30] sm:$0xff] }
   0xe   :  { %321 = vmatprep.mubr.msk.f32.mxu0 %vm44_vm0, %v15_v6  ;;  %333 = vmatprep.mubr.msk.f32.mxu1 %vm44_vm0, %v23_v7  ;;  %v29_v19 = vld [vmem:[%s493_s0 + $0x70] sm:$0xff]  ;;  %v22_v20 = vld [vmem:[%s493_s0 + $0x38] sm:$0xff]  ;;  %v270_v22 = vld [vmem:[%s495_s2] ss:$0 sm:$0xff] }
   0xf   :  { %322 = vmatmul.mubr.msk.f32.vlgmr.msra.gmra.mxu0 %vm44_vm0, %v16_v8  ;;  %334 = vmatmul.mubr.msk.f32.vlgmr.msra.gmra.mxu1 %vm44_vm0, %v24_v9  ;;  %v30_v21 = vld [vmem:[%s493_s0 + $0x78] sm:$0xff]  ;;  %s382_s0 = smov [#allocation2]  }
  0x10   :  { %324 = vmatprep.mubr.msk.f32.mxu0 %vm44_vm0, %v17_v10  ;;  %336 = vmatprep.mubr.msk.f32.mxu1 %vm44_vm0, %v25_v11  ;;  %s259_s2 = sshll.u32 %s382_s0, 4  ;;  %s260_s2 = int_to_ptr.vmem [resolvable:$true] %s259_s2 }
  0x11   :  { %s360_s1 = scalar_lea.vmem %s260_s2, 2048  ;;  %p365_p1 = scmp.lt.s32.totalorder %s260_s2, %s260_s2 }
  0x12   :  { %p361_p0 = scmp.ne.s32.totalorder %s260_s2, %s360_s1  ;;  %p366_p2 = scmp.lt.s32.totalorder %s360_s1, %s360_s1 }
  0x13   :  { %325 = vmatmul.mubr.msk.f32.gmra.mxu0 %vm44_vm0, %v18_v12  ;;  %337 = vmatmul.mubr.msk.f32.gmra.mxu1 %vm44_vm0, %v26_v13 }
  0x14   :  { %327 = vmatprep.mubr.msk.f32.mxu0 %vm44_vm0, %v19_v14  ;;  %339 = vmatprep.mubr.msk.f32.mxu1 %vm44_vm0, %v27_v15  ;;  %p367_p3 = por %p366_p2, %p365_p1 }
  0x16   :  { %p368_p4 = pnand %p367_p3, %p361_p0 }
  0x17   :  { %328 = vmatmul.mubr.msk.f32.gmra.mxu0 %vm44_vm0, %v20_v16  ;;  %340 = vmatmul.mubr.msk.f32.gmra.mxu1 %vm44_vm0, %v28_v17 }
  0x18   :  { %330 = vmatprep.mubr.msk.f32.mxu0 %vm44_vm0, %v21_v18  ;;  %342 = vmatprep.mubr.msk.f32.mxu1 %vm44_vm0, %v29_v19 }
  0x1b   :  { %331 = vmatmul.mubr.msk.f32.gmra.mxu0 %vm44_vm0, %v22_v20  ;;  %343 = vmatmul.mubr.msk.f32.gmra.mxu1 %vm44_vm0, %v30_v21 }
  0xcf   :  { %v323_v23 = vpop.f32.mrf.mxu0  ;;  %v335_v24 = vpop.f32.mrf.mxu1 }
  0xd0   :  { %v165_v25 = vadd.f32 %v323_v23, %v270_v22  ;;  %v205_v26 = vadd.f32 %v335_v24, %v270_v22 }
  0xd1   :  { %v159_v27 = vpop.f32.mrf.mxu0  ;;  %v199_v28 = vpop.f32.mrf.mxu1 }
  0xd2   :  { %239 = vst [vmem:[#allocation2 + $0x8] sm:$0xff] %v165_v25  ;;  %247 = vst [vmem:[#allocation2 + $0x48] sm:$0xff] %v205_v26  ;;  %v160_v29 = vadd.f32 %v270_v22, %v159_v27  ;;  %v200_v30 = vadd.f32 %v270_v22, %v199_v28 }
  0xd3   :  { %v326_v31 = vpop.f32.mrf.mxu0  ;;  %v338_v32 = vpop.f32.mrf.mxu1 }
  0xd4   :  { %238 = vst [vmem:[#allocation2] sm:$0xff] %v160_v29  ;;  %246 = vst [vmem:[#allocation2 + $0x40] sm:$0xff] %v200_v30  ;;  %v175_v33 = vadd.f32 %v326_v31, %v270_v22  ;;  %v215_v34 = vadd.f32 %v338_v32, %v270_v22 }
  0xd5   :  { %v169_v35 = vpop.f32.mrf.mxu0  ;;  %v209_v36 = vpop.f32.mrf.mxu1 }
  0xd6   :  { %241 = vst [vmem:[#allocation2 + $0x18] sm:$0xff] %v175_v33  ;;  %249 = vst [vmem:[#allocation2 + $0x58] sm:$0xff] %v215_v34  ;;  %v170_v37 = vadd.f32 %v270_v22, %v169_v35  ;;  %v210_v38 = vadd.f32 %v270_v22, %v209_v36 }
  0xd7   :  { %v329_v39 = vpop.f32.mrf.mxu0  ;;  %v341_v40 = vpop.f32.mrf.mxu1 }
  0xd8   :  { %240 = vst [vmem:[#allocation2 + $0x10] sm:$0xff] %v170_v37  ;;  %248 = vst [vmem:[#allocation2 + $0x50] sm:$0xff] %v210_v38  ;;  %v185_v41 = vadd.f32 %v329_v39, %v270_v22  ;;  %v225_v42 = vadd.f32 %v341_v40, %v270_v22 }
  0xd9   :  { %v179_v43 = vpop.f32.mrf.mxu0  ;;  %v219_v44 = vpop.f32.mrf.mxu1 }
  0xda   :  { %243 = vst [vmem:[#allocation2 + $0x28] sm:$0xff] %v185_v41  ;;  %251 = vst [vmem:[#allocation2 + $0x68] sm:$0xff] %v225_v42  ;;  %v180_v45 = vadd.f32 %v270_v22, %v179_v43  ;;  %v220_v46 = vadd.f32 %v270_v22, %v219_v44 }
  0xdb   :  { %v332_v47 = vpop.f32.mrf.mxu0  ;;  %v344_v48 = vpop.f32.mrf.mxu1 }
  0xdc   :  { %242 = vst [vmem:[#allocation2 + $0x20] sm:$0xff] %v180_v45  ;;  %250 = vst [vmem:[#allocation2 + $0x60] sm:$0xff] %v220_v46  ;;  %v195_v49 = vadd.f32 %v332_v47, %v270_v22  ;;  %v235_v50 = vadd.f32 %v344_v48, %v270_v22 }
  0xdd   :  { %v189_v51 = vpop.f32.mrf.mxu0  ;;  %v229_v52 = vpop.f32.mrf.mxu1 }
  0xde   :  { %245 = vst [vmem:[#allocation2 + $0x38] sm:$0xff] %v195_v49  ;;  %253 = vst [vmem:[#allocation2 + $0x78] sm:$0xff] %v235_v50  ;;  %v190_v53 = vadd.f32 %v270_v22, %v189_v51  ;;  %v230_v54 = vadd.f32 %v270_v22, %v229_v52 }
  0xe0   :  { %244 = vst [vmem:[#allocation2 + $0x30] sm:$0xff] %v190_v53  ;;  %252 = vst [vmem:[#allocation2 + $0x70] sm:$0xff] %v230_v54 }
  0xe1   :  { %371 = shalt.err (!%p368_p4)
}
  0xe2   :  { %s383_s30 = smov 128   ;;  %s384_s4 = smov 8  }
  0xe3   :  { %265 = dma.vmem_to_hbm [thread:$0]  %s260_s2, 2048, %s496_s3, [#allocation3], %s383_s30, %s383_s30, %s384_s4  }
  0xe4   :  { %380 = dma.done.wait [#allocation3], 2048  }
  0xe5   :  { %381 = vsyncadd [#allocation3], 4294965248 }
  0xe6   :  { %269 = vsyncpa [#allocation3], 1 }

</bundles_post_ra>
